<compile_context>
chip_gen: v6e
topology: v6e:2x2x1
jax: 0.10.0
libtpu: 0.0.40
codegen_flags: <defaults>
</compile_context>

<pallas_src>
import functools
import numpy as np
import jax
import jax.numpy as jnp
from jax.experimental import pallas as pl
from jax.experimental.pallas import tpu as pltpu

# ----- fixed module hyper-parameters (hard-coded in __init__) -----
DIM = 384
HEADS = 16
DIM_HEAD = 64
INNER = HEADS * DIM_HEAD          # 1024
MLP_DIM = 1536
PATCH = 16
CHANNELS = 3
LN_EPS = 1e-5
SCALE = DIM_HEAD ** -0.5

VMEM_LIMIT = 48 * 1024 * 1024     # <= 64 MiB -> valid on v7x too


def _cp(sems):
    return pltpu.CompilerParams(dimension_semantics=sems,
                                vmem_limit_bytes=VMEM_LIMIT)


def _round_up(x, m):
    return (x + m - 1) // m * m


def _batch_block(B, n_tok):
    """Samples per grid block for the fused layer kernel.

    Prefer blocks whose row count (block_b * n_tok) is >= 256 (fills the MXU M dim
    and streams each expert's weights ~once) while keeping >= 2 blocks so v7x's
    second TensorCore has work on the 'parallel' axis.  Split blocks must have a
    row count that is a multiple of 8 (sublane tile).  Otherwise fall back to one
    full-batch block (full-dim BlockSpec exemption).
    """
    for nb in range(2, B + 1):
        if B % nb:
            continue
        bb = B // nb
        rows = bb * n_tok
        if rows % 8 == 0 and rows >= 256:
            return bb
    return B


def _row_block(T, max_tb=256):
    if T <= max_tb:
        return T, T                      # single full block (full-dim exemption)
    return max_tb, _round_up(T, max_tb)  # tile + pad


# ------------------------- in-kernel helpers -------------------------
def _layer_norm(x, g, b):
    mu = jnp.mean(x, axis=-1, keepdims=True)
    var = jnp.mean(jnp.square(x - mu), axis=-1, keepdims=True)
    return (x - mu) * jax.lax.rsqrt(var + LN_EPS) * g + b


_GELU_C = 0.7978845608028654             # sqrt(2/pi)


def _gelu(x):
    # TODO(synk): tanh-approximate GELU (one EUP tanh + a few VPU ops) instead of
    # torch's exact erf GELU; deviation ~1e-3, below the bf16 cast applied right
    # after (deliberate, per perf review).
    return 0.5 * x * (1.0 + jnp.tanh(_GELU_C * (x + 0.044715 * x * x * x)))


# ------------------------- kernels -------------------------
def _patch_embed_kernel(p_ref, ln1g, ln1b, w_ref, b_ref, ln2g, ln2b, o_ref):
    x = p_ref[...]                                       # (TB, patch_dim) f32
    x = _layer_norm(x, ln1g[...], ln1b[...])
    x = jnp.dot(x.astype(jnp.bfloat16), w_ref[...],
                preferred_element_type=jnp.float32) + b_ref[...]
    x = _layer_norm(x, ln2g[...], ln2b[...])
    o_ref[...] = x


def _layer_kernel(idx_ref, x_ref,
                  a_lng, a_lnb, wqkv_ref, wout_ref, bout_ref,
                  f_lng, f_lnb, w1_ref, b1_ref, w2_ref, b2_ref,
                  o_ref, xa_ref, acc_ref, *, bb, n_tok, add_residual):
    """Fused (attention + residual) + (MoE feed-forward) for one transformer layer.

    grid = (batch_blocks, n_active_experts); expert axis is a reduction axis.
    Attention weights have constant block indices -> DMA'd once; expert weights are
    gathered via the scalar-prefetch index list.
    """
    e = pl.program_id(1)
    R = bb * n_tok

    @pl.when(e == 0)
    def _():
        x = x_ref[...]                                       # (R, D) f32
        xn = _layer_norm(x, a_lng[...], a_lnb[...])
        qkv = jnp.dot(xn.astype(jnp.bfloat16), wqkv_ref[...],
                      preferred_element_type=jnp.float32)    # (R, 3*INNER) f32

        def heads(cols):                                     # (R, INNER)->(bb*H, N, d)
            a = cols.reshape(bb, n_tok, HEADS, DIM_HEAD)
            a = jnp.transpose(a, (0, 2, 1, 3))
            return a.reshape(bb * HEADS, n_tok, DIM_HEAD)

        q = heads(qkv[:, :INNER])            # softmax scale pre-folded into wqkv
        k = heads(qkv[:, INNER:2 * INNER])
        v = heads(qkv[:, 2 * INNER:])

        s = jax.lax.dot_general(
            q.astype(jnp.bfloat16), k.astype(jnp.bfloat16),
            (((2,), (2,)), ((0,), (0,))),
            preferred_element_type=jnp.float32)              # (bb*H, N, N)
        s = s - jnp.max(s, axis=-1, keepdims=True)
        p = jnp.exp(s)
        p = p * pl.reciprocal(jnp.sum(p, axis=-1, keepdims=True), approx=True)
        o = jax.lax.dot_general(
            p.astype(jnp.bfloat16), v.astype(jnp.bfloat16),
            (((2,), (1,)), ((0,), (0,))),
            preferred_element_type=jnp.float32)              # (bb*H, N, d)
        o = jnp.transpose(o.reshape(bb, HEADS, n_tok, DIM_HEAD),
                          (0, 2, 1, 3)).reshape(R, INNER)
        attn = jnp.dot(o.astype(jnp.bfloat16), wout_ref[...],
                       preferred_element_type=jnp.float32) + bout_ref[...]
        xa_ref[...] = attn + x                               # attention + residual
        acc_ref[...] = jnp.zeros_like(acc_ref)

    # ---- feed-forward expert e (PreNorm FF), accumulated over the expert axis ----
    xa = xa_ref[...]                                         # (R, D) f32
    xn = _layer_norm(xa, f_lng[0], f_lnb[0])                 # per-expert PreNorm
    h = jnp.dot(xn.astype(jnp.bfloat16), w1_ref[0],
                preferred_element_type=jnp.float32) + b1_ref[0]
    h = _gelu(h)
    y = jnp.dot(h.astype(jnp.bfloat16), w2_ref[0],
                preferred_element_type=jnp.float32) + b2_ref[0]
    acc_ref[...] += y

    @pl.when(e == pl.num_programs(1) - 1)
    def _():
        out = acc_ref[...]
        if add_residual:
            out = out + xa_ref[...]
        o_ref[...] = out


def _final_kernel(x_ref, w_ref, b_ref, o_ref):
    o_ref[...] = (jnp.dot(x_ref[...].astype(jnp.bfloat16), w_ref[...],
                          preferred_element_type=jnp.float32) + b_ref[...])


def _final_multi_kernel(idx_ref, x_ref, w_ref, b_ref, o_ref):
    # per-sample classifier head; head weights gathered via index_map
    o_ref[0] = (jnp.dot(x_ref[0].astype(jnp.bfloat16), w_ref[0],
                        preferred_element_type=jnp.float32) + b_ref[0])


# ------------------------- pallas_call wrappers -------------------------
def patch_embed(patches_2d, enc):
    T, PD = patches_2d.shape
    TB, T_pad = _row_block(T)
    xp = patches_2d
    if T_pad != T:
        xp = jnp.pad(xp, ((0, T_pad - T), (0, 0)))
    out = pl.pallas_call(
        _patch_embed_kernel,
        out_shape=jax.ShapeDtypeStruct((T_pad, DIM), jnp.float32),
        grid=(T_pad // TB,),
        in_specs=[
            pl.BlockSpec((TB, PD), lambda i: (i, 0)),
            pl.BlockSpec((1, PD), lambda i: (0, 0)),
            pl.BlockSpec((1, PD), lambda i: (0, 0)),
            pl.BlockSpec((PD, DIM), lambda i: (0, 0)),
            pl.BlockSpec((1, DIM), lambda i: (0, 0)),
            pl.BlockSpec((1, DIM), lambda i: (0, 0)),
            pl.BlockSpec((1, DIM), lambda i: (0, 0)),
        ],
        out_specs=pl.BlockSpec((TB, DIM), lambda i: (i, 0)),
        compiler_params=_cp(("parallel",)),
    )(xp, enc["ln1g"], enc["ln1b"], enc["w"], enc["b"], enc["ln2g"], enc["ln2b"])
    return out[:T]


def fused_layer(x2d, ap, fp, active, add_residual, block_b, n_tok):
    """One transformer layer (attn + residual + MoE FF) in a single pallas_call."""
    BN, D = x2d.shape
    B = BN // n_tok
    E = len(active)
    R = block_b * n_tok
    idx_arr = jnp.asarray(active, dtype=jnp.int32)
    kern = functools.partial(_layer_kernel, bb=block_b, n_tok=n_tok,
                             add_residual=add_residual)
    return pl.pallas_call(
        kern,
        out_shape=jax.ShapeDtypeStruct((BN, D), jnp.float32),
        grid_spec=pltpu.PrefetchScalarGridSpec(
            num_scalar_prefetch=1,
            grid=(B // block_b, E),
            in_specs=[
                pl.BlockSpec((R, D), lambda b, e, idx: (b, 0)),             # x rows
                pl.BlockSpec((1, D), lambda b, e, idx: (0, 0)),             # attn ln g
                pl.BlockSpec((1, D), lambda b, e, idx: (0, 0)),             # attn ln b
                pl.BlockSpec((D, 3 * INNER), lambda b, e, idx: (0, 0)),     # wqkv
                pl.BlockSpec((INNER, D), lambda b, e, idx: (0, 0)),         # wout
                pl.BlockSpec((1, D), lambda b, e, idx: (0, 0)),             # bout
                pl.BlockSpec((1, 1, D), lambda b, e, idx: (idx[e], 0, 0)),  # ff ln g
                pl.BlockSpec((1, 1, D), lambda b, e, idx: (idx[e], 0, 0)),  # ff ln b
                pl.BlockSpec((1, D, MLP_DIM), lambda b, e, idx: (idx[e], 0, 0)),
                pl.BlockSpec((1, 1, MLP_DIM), lambda b, e, idx: (idx[e], 0, 0)),
                pl.BlockSpec((1, MLP_DIM, D), lambda b, e, idx: (idx[e], 0, 0)),
                pl.BlockSpec((1, 1, D), lambda b, e, idx: (idx[e], 0, 0)),
            ],
            out_specs=pl.BlockSpec((R, D), lambda b, e, idx: (b, 0)),
            scratch_shapes=[pltpu.VMEM((R, D), jnp.float32),   # attn out + residual
                            pltpu.VMEM((R, D), jnp.float32)],  # expert accumulator
        ),
        compiler_params=_cp(("parallel", "arbitrary")),
    )(idx_arr, x2d, ap["lng"], ap["lnb"], ap["wqkv"], ap["wout"], ap["bout"],
      fp["lng"], fp["lnb"], fp["w1"], fp["b1"], fp["w2"], fp["b2"])


def final_linear(x, w, b):
    B, D = x.shape
    Cpad = w.shape[1]
    return pl.pallas_call(
        _final_kernel,
        out_shape=jax.ShapeDtypeStruct((B, Cpad), jnp.float32),
        grid=(1,),
        in_specs=[
            pl.BlockSpec((B, D), lambda i: (0, 0)),
            pl.BlockSpec((D, Cpad), lambda i: (0, 0)),
            pl.BlockSpec((1, Cpad), lambda i: (0, 0)),
        ],
        out_specs=pl.BlockSpec((B, Cpad), lambda i: (0, 0)),
        compiler_params=_cp(("arbitrary",)),
    )(x, w, b)


def final_multi(x, wf_stack, bf_stack, idxs):
    B, D = x.shape
    Cpad = wf_stack.shape[-1]
    idx_arr = jnp.asarray(idxs, dtype=jnp.int32)
    x3 = x.reshape(B, 1, D)
    out = pl.pallas_call(
        _final_multi_kernel,
        out_shape=jax.ShapeDtypeStruct((B, 1, Cpad), jnp.float32),
        grid_spec=pltpu.PrefetchScalarGridSpec(
            num_scalar_prefetch=1,
            grid=(B,),
            in_specs=[
                pl.BlockSpec((1, 1, D), lambda i, idx: (i, 0, 0)),
                pl.BlockSpec((1, D, Cpad), lambda i, idx: (idx[i], 0, 0)),
                pl.BlockSpec((1, 1, Cpad), lambda i, idx: (idx[i], 0, 0)),
            ],
            out_specs=pl.BlockSpec((1, 1, Cpad), lambda i, idx: (i, 0, 0)),
        ),
        compiler_params=_cp(("arbitrary",)),
    )(idx_arr, x3, wf_stack, bf_stack)
    return out.reshape(B, Cpad)


# ------------------------- full forward (glue + kernels) -------------------------
def forward(img, path, last, params, M):
    enc = params["enc"]
    B, C, Himg, Wimg = img.shape
    h, w = Himg // PATCH, Wimg // PATCH
    num_patches = h * w
    n_tok = num_patches + 1

    # Rearrange('b c (h p1) (w p2) -> b (h w) (p1 p2 c)') — kept as an XLA reshape/
    # transpose (negligible at 32x32; TODO(synk): fold into the patch_embed BlockSpec
    # for large images).
    patches = img.reshape(B, C, h, PATCH, w, PATCH)
    patches = patches.transpose(0, 2, 4, 3, 5, 1).reshape(
        B * num_patches, PATCH * PATCH * C)

    tok = patch_embed(patches, enc).reshape(B, num_patches, DIM)
    cls = jnp.broadcast_to(params["cls_tok"], (B, 1, DIM))
    x = jnp.concatenate([cls, tok], axis=1) + params["pos_emb"][:, :n_tok]
    # emb_dropout / block_dropout are identity in eval mode.
    x2d = x.reshape(B * n_tok, DIM)      # flat 2-D residual stream between layers

    block_b = _batch_block(B, n_tok)
    for L in range(9):
        ap = params["attn"][L]
        fp = params["ff"][L]
        e_total = fp["w1"].shape[0]
        if L in (3, 5, 7):               # layers 4, 6, 8: l[-1] base, no residual
            active = [e_total - 1] + [j for j in range(M) if path[L][j] == 1]
            add_res = False
        else:                            # layers 1,2,3,5,7,9: l[0] base, + residual
            active = [0] + [j for j in range(1, M) if path[L][j] == 1]
            add_res = True
        x2d = fused_layer(x2d, ap, fp, active, add_res, block_b, n_tok)

    x_cls = x2d.reshape(B, n_tok, DIM)[:, 0]     # cls pooling
    wf, bf, Cs = params["final_w"], params["final_b"], params["final_cs"]
    n_heads = wf.shape[0]
    if isinstance(last, int):
        logits = final_linear(x_cls, wf[last], bf[last])
        return logits[:, :Cs[last]]
    else:
        idxs = [(int(i) if int(i) < n_heads else n_heads - 1) for i in last]
        logits = final_multi(x_cls, wf, bf, idxs)
        # NOTE: like the PyTorch reference (torch.cat over per-sample head outputs),
        # this only makes sense when all selected heads share one class count.
        return logits[:, :Cs[idxs[0]]]


# ------------------------- parameter construction -------------------------
def build_params(key, image_size, M, n_task_cls, n_test_cls):
    patch_dim = CHANNELS * PATCH * PATCH
    num_patches = (image_size // PATCH) ** 2
    cnt = [0]

    def nk():
        cnt[0] += 1
        return jax.random.fold_in(key, cnt[0])

    def linear(fin, fout, bias=True):
        k1, k2 = jax.random.split(nk())
        bound = 1.0 / np.sqrt(fin)
        Wt = jax.random.uniform(k1, (fin, fout), jnp.float32, -bound, bound)
        if bias:
            b = jax.random.uniform(k2, (1, fout), jnp.float32, -bound, bound)
            return Wt, b
        return Wt

    enc = dict(ln1g=jnp.ones((1, patch_dim), jnp.float32),
               ln1b=jnp.zeros((1, patch_dim), jnp.float32),
               ln2g=jnp.ones((1, DIM), jnp.float32),
               ln2b=jnp.zeros((1, DIM), jnp.float32))
    we, be = linear(patch_dim, DIM)
    enc["w"] = we.astype(jnp.bfloat16)
    enc["b"] = be

    pos_emb = jax.random.normal(nk(), (1, num_patches + 1, DIM), jnp.float32)
    cls_tok = jax.random.normal(nk(), (1, 1, DIM), jnp.float32)

    attn = []
    for _ in range(9):
        wqkv = linear(DIM, 3 * INNER, bias=False)
        wqkv = wqkv.at[:, :INNER].multiply(SCALE)       # fold softmax scale into Q
        wout, bout = linear(INNER, DIM)
        attn.append(dict(lng=jnp.ones((1, DIM), jnp.float32),
                         lnb=jnp.zeros((1, DIM), jnp.float32),
                         wqkv=wqkv.astype(jnp.bfloat16),
                         wout=wout.astype(jnp.bfloat16),
                         bout=bout))

    def make_ff_stack(n_exp):
        lngs, lnbs, w1s, b1s, w2s, b2s = [], [], [], [], [], []
        for _ in range(n_exp):
            w1, b1 = linear(DIM, MLP_DIM)
            w2, b2 = linear(MLP_DIM, DIM)
            lngs.append(jnp.ones((1, DIM), jnp.float32))
            lnbs.append(jnp.zeros((1, DIM), jnp.float32))
            w1s.append(w1); b1s.append(b1); w2s.append(w2); b2s.append(b2)
        # TODO(synk): fp8 (v7x) / int8 (v5e,v6e) expert weights would halve the
        # binding weight-DMA traffic; kept bf16 here for exactness.
        return dict(lng=jnp.stack(lngs), lnb=jnp.stack(lnbs),
                    w1=jnp.stack(w1s).astype(jnp.bfloat16), b1=jnp.stack(b1s),
                    w2=jnp.stack(w2s).astype(jnp.bfloat16), b2=jnp.stack(b2s))

    ff = []
    for L in range(9):
        n_exp = M + (1 if L in (3, 5, 7) else 0)        # l4,l6,l8 get an extra expert
        ff.append(make_ff_stack(n_exp))

    # classifier heads, stacked and lane-padded to a multiple of 128
    Cs = [n_task_cls, n_test_cls]
    Cpad = max(_round_up(c, 128) for c in Cs)
    wfs, bfs = [], []
    for c in Cs:
        w_, b_ = linear(DIM, c)
        wfs.append(jnp.pad(w_, ((0, 0), (0, Cpad - c))))
        bfs.append(jnp.pad(b_, ((0, 0), (0, Cpad - c))))
    final_w = jnp.stack(wfs).astype(jnp.bfloat16)       # (n_heads, D, Cpad)
    final_b = jnp.stack(bfs)                            # (n_heads, 1, Cpad)

    return dict(enc=enc, pos_emb=pos_emb, cls_tok=cls_tok, attn=attn, ff=ff,
                final_w=final_w, final_b=final_b, final_cs=Cs)


# ------------------------- demo -------------------------
if __name__ == "__main__":
    M = 2
    image_size = 32                     # -> 4 patches + cls = 5 tokens
    class_per_task = 10
    num_train_task = 1
    num_test_class = 10

    key = jax.random.PRNGKey(0)
    params = build_params(key, image_size, M,
                          class_per_task * num_train_task, num_test_class)

    img = jax.random.normal(jax.random.fold_in(key, 12345),
                            (2, CHANNELS, image_size, image_size), jnp.float32)
    path = [[1, 1], [1, 0], [1, 1], [0, 1], [1, 1],
            [1, 0], [1, 1], [0, 1], [1, 1]]              # shape (9, M)

    # int `last` -> single classifier head
    out = forward(img, path, 0, params, M)
    out = jax.block_until_ready(out)
    assert out.shape == (2, class_per_task * num_train_task)
    assert bool(jnp.all(jnp.isfinite(out)))

    # array `last` -> per-sample head selection (5 >= n_heads maps to test head)
    out2 = forward(img, path, [0, 5], params, M)
    out2 = jax.block_until_ready(out2)
    assert out2.shape == (2, class_per_task * num_train_task)
    assert bool(jnp.all(jnp.isfinite(out2)))

    print("KERNEL_OK")
</pallas_src>

<mosaic_0001>
module attributes {stable_mosaic.version = 11 : i64} {
  func.func @_patch_embed_kernel(%arg0: i32, %arg1: memref<8x768xf32, #tpu.memory_space<vmem>>, %arg2: memref<1x768xf32, #tpu.memory_space<vmem>>, %arg3: memref<1x768xf32, #tpu.memory_space<vmem>>, %arg4: memref<768x384xbf16, #tpu.memory_space<vmem>>, %arg5: memref<1x384xf32, #tpu.memory_space<vmem>>, %arg6: memref<1x384xf32, #tpu.memory_space<vmem>>, %arg7: memref<1x384xf32, #tpu.memory_space<vmem>>, %arg8: memref<8x384xf32, #tpu.memory_space<vmem>>) attributes {dimension_semantics = [#tpu.dimension_semantics<parallel>], iteration_bounds = array<i64: 1>, scalar_prefetch = 0 : i64, scratch_operands = 0 : i64, tpu.core_type = #tpu.core_type<tc>, window_params = [{transform_indices = @transform_0, window_bounds = array<i64: 8, 768>}, {pipeline_mode = #tpu.pipeline_mode<synchronous>, transform_indices = @transform_1, window_bounds = array<i64: 1, 768>}, {pipeline_mode = #tpu.pipeline_mode<synchronous>, transform_indices = @transform_2, window_bounds = array<i64: 1, 768>}, {pipeline_mode = #tpu.pipeline_mode<synchronous>, transform_indices = @transform_3, window_bounds = array<i64: 768, 384>}, {pipeline_mode = #tpu.pipeline_mode<synchronous>, transform_indices = @transform_4, window_bounds = array<i64: 1, 384>}, {pipeline_mode = #tpu.pipeline_mode<synchronous>, transform_indices = @transform_5, window_bounds = array<i64: 1, 384>}, {pipeline_mode = #tpu.pipeline_mode<synchronous>, transform_indices = @transform_6, window_bounds = array<i64: 1, 384>}, {transform_indices = @transform_7, window_bounds = array<i64: 8, 384>}]} {
    %c0 = arith.constant 0 : index
    %c0_0 = arith.constant 0 : index
    %0 = vector.load %arg1[%c0, %c0_0] : memref<8x768xf32, #tpu.memory_space<vmem>>, vector<8x768xf32>
    %c0_1 = arith.constant 0 : index
    %c0_2 = arith.constant 0 : index
    %1 = vector.load %arg2[%c0_1, %c0_2] : memref<1x768xf32, #tpu.memory_space<vmem>>, vector<1x768xf32>
    %c0_3 = arith.constant 0 : index
    %c0_4 = arith.constant 0 : index
    %2 = vector.load %arg3[%c0_3, %c0_4] : memref<1x768xf32, #tpu.memory_space<vmem>>, vector<1x768xf32>
    %cst = arith.constant dense<0.000000e+00> : vector<8xf32>
    %3 = vector.multi_reduction <add>, %0, %cst [1] : vector<8x768xf32> to vector<8xf32>
    %4 = vector.shape_cast %3 : vector<8xf32> to vector<8x1xf32>
    %cst_5 = arith.constant 7.680000e+02 : f32
    %5 = vector.broadcast %cst_5 : f32 to vector<8x1xf32>
    %6 = arith.divf %4, %5 : vector<8x1xf32>
    %7 = vector.broadcast %6 : vector<8x1xf32> to vector<8x768xf32>
    %8 = arith.subf %0, %7 : vector<8x768xf32>
    %9 = arith.mulf %8, %8 : vector<8x768xf32>
    %cst_6 = arith.constant dense<0.000000e+00> : vector<8xf32>
    %10 = vector.multi_reduction <add>, %9, %cst_6 [1] : vector<8x768xf32> to vector<8xf32>
    %11 = vector.shape_cast %10 : vector<8xf32> to vector<8x1xf32>
    %cst_7 = arith.constant 7.680000e+02 : f32
    %12 = vector.broadcast %cst_7 : f32 to vector<8x1xf32>
    %13 = arith.divf %11, %12 : vector<8x1xf32>
    %14 = vector.broadcast %6 : vector<8x1xf32> to vector<8x768xf32>
    %15 = arith.subf %0, %14 : vector<8x768xf32>
    %cst_8 = arith.constant 9.99999974E-6 : f32
    %16 = vector.broadcast %cst_8 : f32 to vector<8x1xf32>
    %17 = arith.addf %13, %16 : vector<8x1xf32>
    %18 = math.rsqrt %17 : vector<8x1xf32>
    %19 = vector.broadcast %18 : vector<8x1xf32> to vector<8x768xf32>
    %20 = arith.mulf %15, %19 : vector<8x768xf32>
    %21 = vector.broadcast %1 : vector<1x768xf32> to vector<8x768xf32>
    %22 = arith.mulf %20, %21 : vector<8x768xf32>
    %23 = vector.broadcast %2 : vector<1x768xf32> to vector<8x768xf32>
    %24 = arith.addf %22, %23 : vector<8x768xf32>
    %25 = arith.truncf %24 : vector<8x768xf32> to vector<8x768xbf16>
    %c0_9 = arith.constant 0 : index
    %c0_10 = arith.constant 0 : index
    %26 = vector.load %arg4[%c0_9, %c0_10] : memref<768x384xbf16, #tpu.memory_space<vmem>>, vector<768x384xbf16>
    %cst_11 = arith.constant dense<0.000000e+00> : vector<8x384xf32>
    %27 = tpu.matmul %25, %26, %cst_11 {dimension_numbers = #tpu.dot_dimension_numbers<[1], [0], [0], [1], [0, 0, 1, 1], [], []>} : vector<8x768xbf16>, vector<768x384xbf16>, vector<8x384xf32> -> vector<8x384xf32>
    %c0_12 = arith.constant 0 : index
    %c0_13 = arith.constant 0 : index
    %28 = vector.load %arg5[%c0_12, %c0_13] : memref<1x384xf32, #tpu.memory_space<vmem>>, vector<1x384xf32>
    %29 = vector.broadcast %28 : vector<1x384xf32> to vector<8x384xf32>
    %30 = arith.addf %27, %29 : vector<8x384xf32>
    %c0_14 = arith.constant 0 : index
    %c0_15 = arith.constant 0 : index
    %31 = vector.load %arg6[%c0_14, %c0_15] : memref<1x384xf32, #tpu.memory_space<vmem>>, vector<1x384xf32>
    %c0_16 = arith.constant 0 : index
    %c0_17 = arith.constant 0 : index
    %32 = vector.load %arg7[%c0_16, %c0_17] : memref<1x384xf32, #tpu.memory_space<vmem>>, vector<1x384xf32>
    %cst_18 = arith.constant dense<0.000000e+00> : vector<8xf32>
    %33 = vector.multi_reduction <add>, %30, %cst_18 [1] : vector<8x384xf32> to vector<8xf32>
    %34 = vector.shape_cast %33 : vector<8xf32> to vector<8x1xf32>
    %cst_19 = arith.constant 3.840000e+02 : f32
    %35 = vector.broadcast %cst_19 : f32 to vector<8x1xf32>
    %36 = arith.divf %34, %35 : vector<8x1xf32>
    %37 = vector.broadcast %36 : vector<8x1xf32> to vector<8x384xf32>
    %38 = arith.subf %30, %37 : vector<8x384xf32>
    %39 = arith.mulf %38, %38 : vector<8x384xf32>
    %cst_20 = arith.constant dense<0.000000e+00> : vector<8xf32>
    %40 = vector.multi_reduction <add>, %39, %cst_20 [1] : vector<8x384xf32> to vector<8xf32>
    %41 = vector.shape_cast %40 : vector<8xf32> to vector<8x1xf32>
    %cst_21 = arith.constant 3.840000e+02 : f32
    %42 = vector.broadcast %cst_21 : f32 to vector<8x1xf32>
    %43 = arith.divf %41, %42 : vector<8x1xf32>
    %44 = vector.broadcast %36 : vector<8x1xf32> to vector<8x384xf32>
    %45 = arith.subf %30, %44 : vector<8x384xf32>
    %cst_22 = arith.constant 9.99999974E-6 : f32
    %46 = vector.broadcast %cst_22 : f32 to vector<8x1xf32>
    %47 = arith.addf %43, %46 : vector<8x1xf32>
    %48 = math.rsqrt %47 : vector<8x1xf32>
    %49 = vector.broadcast %48 : vector<8x1xf32> to vector<8x384xf32>
    %50 = arith.mulf %45, %49 : vector<8x384xf32>
    %51 = vector.broadcast %31 : vector<1x384xf32> to vector<8x384xf32>
    %52 = arith.mulf %50, %51 : vector<8x384xf32>
    %53 = vector.broadcast %32 : vector<1x384xf32> to vector<8x384xf32>
    %54 = arith.addf %52, %53 : vector<8x384xf32>
    %c0_23 = arith.constant 0 : index
    %c0_24 = arith.constant 0 : index
    %55 = vector.load %arg8[%c0_23, %c0_24] : memref<8x384xf32, #tpu.memory_space<vmem>>, vector<8x384xf32>
    tpu.vector_store %arg8[%c0_23, %c0_24], %54 {strides = array<i32>} : memref<8x384xf32, #tpu.memory_space<vmem>>, vector<8x384xf32>,
    return
  }
  func.func @transform_0(%arg0: i32) -> (i32, i32) {
    %c0_i32 = arith.constant 0 : i32
    %c0_i32_0 = arith.constant 0 : i32
    return %arg0, %c0_i32 : i32, i32
  }
  func.func @transform_1(%arg0: i32) -> (i32, i32) {
    %c0_i32 = arith.constant 0 : i32
    %c0_i32_0 = arith.constant 0 : i32
    %c0_i32_1 = arith.constant 0 : i32
    return %c0_i32, %c0_i32_0 : i32, i32
  }
  func.func @transform_2(%arg0: i32) -> (i32, i32) {
    %c0_i32 = arith.constant 0 : i32
    %c0_i32_0 = arith.constant 0 : i32
    %c0_i32_1 = arith.constant 0 : i32
    return %c0_i32, %c0_i32_0 : i32, i32
  }
  func.func @transform_3(%arg0: i32) -> (i32, i32) {
    %c0_i32 = arith.constant 0 : i32
    %c0_i32_0 = arith.constant 0 : i32
    %c0_i32_1 = arith.constant 0 : i32
    return %c0_i32, %c0_i32_0 : i32, i32
  }
  func.func @transform_4(%arg0: i32) -> (i32, i32) {
    %c0_i32 = arith.constant 0 : i32
    %c0_i32_0 = arith.constant 0 : i32
    %c0_i32_1 = arith.constant 0 : i32
    return %c0_i32, %c0_i32_0 : i32, i32
  }
  func.func @transform_5(%arg0: i32) -> (i32, i32) {
    %c0_i32 = arith.constant 0 : i32
    %c0_i32_0 = arith.constant 0 : i32
    %c0_i32_1 = arith.constant 0 : i32
    return %c0_i32, %c0_i32_0 : i32, i32
  }
  func.func @transform_6(%arg0: i32) -> (i32, i32) {
    %c0_i32 = arith.constant 0 : i32
    %c0_i32_0 = arith.constant 0 : i32
    %c0_i32_1 = arith.constant 0 : i32
    return %c0_i32, %c0_i32_0 : i32, i32
  }
  func.func @transform_7(%arg0: i32) -> (i32, i32) {
    %c0_i32 = arith.constant 0 : i32
    %c0_i32_0 = arith.constant 0 : i32
    return %arg0, %c0_i32 : i32, i32
  }
}

</mosaic_0001>

<bundles_post_ra>
// kernel: tpu_custom_call.1
= control target key start
LH: loop header
LB: loop body
LE: loop exit
PB: predicated region body
PF: predicated region fallthrough
CT: control target
= control target key end

     0   :  { %12 = vsyncpa [#allocation3], 0  ;;  %s2191_s0 = inlined_call_operand.hbm [shape: f32[8,768], index: 0, kind: input, shape index: {}]   ;;  %s2192_s1 = inlined_call_operand.hbm [shape: f32[1,768], index: 1, kind: input, shape index: {}]   ;;  %s2193_s2 = inlined_call_operand.hbm [shape: f32[1,768], index: 2, kind: input, shape index: {}]   ;;  %s2194_s3 = inlined_call_operand.hbm [shape: bf16[768,384], index: 3, kind: input, shape index: {}]   ;;  %s2195_s4 = inlined_call_operand.vmem [shape: f32[1,384], index: 4, kind: input, shape index: {}]   ;;  %s2196_s5 = inlined_call_operand.vmem [shape: f32[1,384], index: 5, kind: input, shape index: {}]   ;;  %s2197_s6 = inlined_call_operand.vmem [shape: f32[1,384], index: 6, kind: input, shape index: {}]   ;;  %s2198_s7 = inlined_call_operand.hbm [shape: f32[8,384], index: 7, kind: output, shape index: {}]  }
   0x1   :  { %13 = vsyncpa [#allocation6], 0 }
   0x2   :  { %14 = vsyncpa [#allocation9], 0 }
   0x3   :  { %15 = vsyncpa [#allocation4], 0  ;;  %s2025_s24 = smov [#allocation5]   ;;  %s2026_s26 = smov [#allocation2]  }
   0x4   :  { %s32_s25 = sshll.u32 %s2025_s24, 4  ;;  %s22_s27 = sshll.u32 %s2026_s26, 4  ;;  %s33_s25 = int_to_ptr.vmem [resolvable:$true] %s32_s25  ;;  %s23_s27 = int_to_ptr.vmem [resolvable:$true] %s22_s27 }
   0x5   :  { %s1925_s28 = scalar_lea.vmem %s33_s25, 96  ;;  %p1930_p1 = scmp.lt.s32.totalorder %s33_s25, %s33_s25 }
   0x6   :  { %p1926_p0 = scmp.ne.s32.totalorder %s33_s25, %s1925_s28  ;;  %p1931_p2 = scmp.lt.s32.totalorder %s1925_s28, %s1925_s28 }
   0x8   :  { %p1932_p3 = por %p1931_p2, %p1930_p1 }
   0xa   :  { %p1933_p4 = pnand %p1932_p3, %p1926_p0 }
   0xc   :  { %1936 = shalt.err (!%p1933_p4)
}
   0xd   :  { %35 = dma.hbm_to_vmem [thread:$0]  %s2192_s1, 96, %s33_s25, [#allocation6]  }
   0xe   :  { %s1945_s8 = scalar_lea.vmem %s23_s27, 768  ;;  %p1950_p6 = scmp.lt.s32.totalorder %s23_s27, %s23_s27 }
   0xf   :  { %p1946_p5 = scmp.ne.s32.totalorder %s23_s27, %s1945_s8  ;;  %p1951_p7 = scmp.lt.s32.totalorder %s1945_s8, %s1945_s8 }
  0x11   :  { %p1952_p8 = por %p1951_p7, %p1950_p6 }
  0x13   :  { %p1953_p9 = pnand %p1952_p8, %p1946_p5 }
  0x15   :  { %1956 = shalt.err (!%p1953_p9)
}
  0x16   :  { %25 = dma.hbm_to_vmem [thread:$0]  %s2191_s0, 768, %s23_s27, [#allocation3]  }
  0x17   :  { %s2027_s11 = smov [#allocation7]   ;;  %s2028_s13 = smov [#allocation8]  }
  0x18   :  { %s42_s12 = sshll.u32 %s2027_s11, 4  ;;  %s51_s14 = sshll.u32 %s2028_s13, 4  ;;  %s43_s12 = int_to_ptr.vmem [resolvable:$true] %s42_s12  ;;  %s52_s14 = int_to_ptr.vmem [resolvable:$true] %s51_s14 }
  0x19   :  { %s1965_s15 = scalar_lea.vmem %s43_s12, 96  ;;  %p1970_p11 = scmp.lt.s32.totalorder %s43_s12, %s43_s12 }
  0x1a   :  { %p1966_p10 = scmp.ne.s32.totalorder %s43_s12, %s1965_s15  ;;  %p1971_p12 = scmp.lt.s32.totalorder %s1965_s15, %s1965_s15 }
  0x1c   :  { %p1972_p13 = por %p1971_p12, %p1970_p11 }
  0x1e   :  { %p1973_p0 = pnand %p1972_p13, %p1966_p10 }
  0x20   :  { %1976 = shalt.err (!%p1973_p0)
}
  0x21   :  { %45 = dma.hbm_to_vmem [thread:$0]  %s2193_s2, 96, %s43_s12, [#allocation6]  }
  0x22   :  { %s1985_s17 = scalar_lea.vmem %s52_s14, 18432  ;;  %p1990_p2 = scmp.lt.s32.totalorder %s52_s14, %s52_s14 }
  0x23   :  { %p1986_p1 = scmp.ne.s32.totalorder %s52_s14, %s1985_s17  ;;  %p1991_p3 = scmp.lt.s32.totalorder %s1985_s17, %s1985_s17 }
  0x25   :  { %p1992_p4 = por %p1991_p3, %p1990_p2 }
  0x27   :  { %p1993_p5 = pnand %p1992_p4, %p1986_p1 }
  0x29   :  { %1996 = shalt.err (!%p1993_p5)
}
  0x2a   :  { %s2029_s0 = smov 192   ;;  %s2030_s18 = smov 12  }
  0x2b   :  { %57 = dma.hbm_to_vmem [thread:$0]  %s2194_s3, 18432, %s52_s14, [#allocation9], %s2029_s0, %s2029_s0, %s2030_s18  }
  0x2c   :  { %2017 = dma.done.wait [#allocation3], 768  }
  0x2d   :  { %2018 = vsyncadd [#allocation3], 4294966528 }
  0x2e   :  { %2019 = dma.done.wait [#allocation6], 192  }
  0x2f   :  { %2020 = vsyncadd [#allocation6], 4294967104 }
  0x30   :  { %2021 = dma.done.wait [#allocation9], 18432  }
  0x31   :  { %2022 = vsyncadd [#allocation9], 4294948864  ;;  %v2084_v0 = vld [vmem:[#allocation2] sm:$0xff]  ;;  %v2086_v1 = vld [vmem:[#allocation2 + $0x8] sm:$0xff] }
  0x32   :  { %v2088_v2 = vld [vmem:[#allocation2 + $0x10] sm:$0xff]  ;;  %v2090_v3 = vld [vmem:[#allocation2 + $0x18] sm:$0xff]  ;;  %v85_v4 = vadd.f32 %v2086_v1, %v2084_v0  ;;  %v2094_v5 = vld [vmem:[#allocation2 + $0x20] sm:$0xff] }
  0x33   :  { %v2097_v7 = vld [vmem:[#allocation2 + $0x28] sm:$0xff]  ;;  %v1725_v13 = vld [vmem:[#allocation8 + $0xa8] ss:$12 sps:$4 sm:$0xff]   ;;  %v1737_v21 = vld [vmem:[#allocation8 + $0x78] ss:$12 sps:$4 sm:$0xff]  }
  0x34   :  { %v86_v6 = vadd.f32 %v85_v4, %v2088_v2  ;;  %v1721_v11 = vld [vmem:[#allocation8 + $0xac] ss:$12 sps:$4 sm:$0xff]   ;;  %v1726_v14 = vld [vmem:[#allocation8 + $0x228] ss:$12 sps:$4 sm:$0xff]   ;;  %v1731_v17 = vld [vmem:[#allocation8 + $0x90] ss:$12 sps:$4 sm:$0xff]  }
  0x35   :  { %v1723_v12 = vld [vmem:[#allocation8 + $0x22c] ss:$12 sps:$4 sm:$0xff]   ;;  %v1727_v15 = vld [vmem:[#allocation8 + $0x94] ss:$12 sps:$4 sm:$0xff]   ;;  %1179 = vmatprep.subr.bf16.mxu0 %v1721_v11  ;;  %v1732_v18 = vld [vmem:[#allocation8 + $0x210] ss:$12 sps:$4 sm:$0xff]  }
  0x36   :  { %v87_v8 = vadd.f32 %v86_v6, %v2090_v3  ;;  %v1729_v16 = vld [vmem:[#allocation8 + $0x214] ss:$12 sps:$4 sm:$0xff]   ;;  %1220 = vmatprep.subr.bf16.mxu1 %v1723_v12  ;;  %1180 = vmatpush1.bf16.msra.mxu0 %v1725_v13  ;;  %v1733_v19 = vld [vmem:[#allocation8 + $0x7c] ss:$12 sps:$4 sm:$0xff]   ;;  %v1738_v22 = vld [vmem:[#allocation8 + $0x1f8] ss:$12 sps:$4 sm:$0xff]  }
  0x37   :  { %1221 = vmatpush1.bf16.msra.mxu1 %v1726_v14  ;;  %1181 = vmatprep.subr.bf16.mxu0 %v1727_v15  ;;  %v1735_v20 = vld [vmem:[#allocation8 + $0x1fc] ss:$12 sps:$4 sm:$0xff]   ;;  %v1739_v23 = vld [vmem:[#allocation8 + $0x64] ss:$12 sps:$4 sm:$0xff]   ;;  %v1743_v25 = vld [vmem:[#allocation8 + $0x60] ss:$12 sps:$4 sm:$0xff]  }
  0x38   :  { %v88_v9 = vadd.f32 %v87_v8, %v2094_v5  ;;  %1222 = vmatprep.subr.bf16.mxu1 %v1729_v16  ;;  %v1741_v24 = vld [vmem:[#allocation8 + $0x1e4] ss:$12 sps:$4 sm:$0xff]   ;;  %v1744_v26 = vld [vmem:[#allocation8 + $0x1e0] ss:$12 sps:$4 sm:$0xff]   ;;  %v1749_v29 = vld [vmem:[#allocation8 + $0x48] ss:$12 sps:$4 sm:$0xff]  }
  0x39   :  { %v1745_v27 = vld [vmem:[#allocation8 + $0x4c] ss:$12 sps:$4 sm:$0xff]   ;;  %v1750_v30 = vld [vmem:[#allocation8 + $0x1c8] ss:$12 sps:$4 sm:$0xff]   ;;  %v1755_v33 = vld [vmem:[#allocation8 + $0x30] ss:$12 sps:$4 sm:$0xff]  }
  0x3a   :  { %v89_v10 = vadd.f32 %v88_v9, %v2097_v7  ;;  %1182 = vmatpush1.bf16.msra.mxu0 %v1731_v17  ;;  %v1747_v28 = vld [vmem:[#allocation8 + $0x1cc] ss:$12 sps:$4 sm:$0xff]   ;;  %v1751_v31 = vld [vmem:[#allocation8 + $0x34] ss:$12 sps:$4 sm:$0xff]   ;;  %v1756_v34 = vld [vmem:[#allocation8 + $0x1b0] ss:$12 sps:$4 sm:$0xff]  }
  0x3b   :  { %1223 = vmatpush1.bf16.msra.mxu1 %v1732_v18  ;;  %1183 = vmatprep.subr.bf16.mxu0 %v1733_v19  ;;  %v1753_v32 = vld [vmem:[#allocation8 + $0x1b4] ss:$12 sps:$4 sm:$0xff]   ;;  %v1757_v35 = vld [vmem:[#allocation8 + $0x1c] ss:$12 sps:$4 sm:$0xff]   ;;  %v1761_v37 = vld [vmem:[#allocation8 + $0x18] ss:$12 sps:$4 sm:$0xff]  }
  0x3c   :  { %90 = vadd.xlane.f32.xlu0 %v89_v10  ;;  %1224 = vmatprep.subr.bf16.mxu1 %v1735_v20  ;;  %v1759_v36 = vld [vmem:[#allocation8 + $0x19c] ss:$12 sps:$4 sm:$0xff]   ;;  %v1762_v38 = vld [vmem:[#allocation8 + $0x198] ss:$12 sps:$4 sm:$0xff]   ;;  %v1767_v41 = vld [vmem:[#allocation8] ss:$12 sps:$4 sm:$0xff]  }
  0x3d   :  { %v1763_v39 = vld [vmem:[#allocation8 + $0x4] ss:$12 sps:$4 sm:$0xff]   ;;  %v1768_v42 = vld [vmem:[#allocation8 + $0x180] ss:$12 sps:$4 sm:$0xff]   ;;  %v1773_v45 = vld [vmem:[#allocation8 + $0x168] ss:$12 sps:$4 sm:$0xff]  }
  0x3e   :  { %1184 = vmatpush1.bf16.msra.mxu0 %v1737_v21  ;;  %v1765_v40 = vld [vmem:[#allocation8 + $0x184] ss:$12 sps:$4 sm:$0xff]   ;;  %v1769_v43 = vld [vmem:[#allocation8 + $0x16c] ss:$12 sps:$4 sm:$0xff]   ;;  %v1774_v46 = vld [vmem:[#allocation8 + $0x2e8] ss:$12 sps:$4 sm:$0xff]  }
  0x3f   :  { %1225 = vmatpush1.bf16.msra.mxu1 %v1738_v22  ;;  %1185 = vmatprep.subr.bf16.mxu0 %v1739_v23  ;;  %v1771_v44 = vld [vmem:[#allocation8 + $0x2ec] ss:$12 sps:$4 sm:$0xff]   ;;  %v1775_v47 = vld [vmem:[#allocation8 + $0x154] ss:$12 sps:$4 sm:$0xff]   ;;  %v1779_v49 = vld [vmem:[#allocation8 + $0x150] ss:$12 sps:$4 sm:$0xff]  }
  0x40   :  { %1226 = vmatprep.subr.bf16.mxu1 %v1741_v24  ;;  %v1777_v48 = vld [vmem:[#allocation8 + $0x2d4] ss:$12 sps:$4 sm:$0xff]   ;;  %v1780_v50 = vld [vmem:[#allocation8 + $0x2d0] ss:$12 sps:$4 sm:$0xff]   ;;  %v1785_v9 = vld [vmem:[#allocation8 + $0x138] ss:$12 sps:$4 sm:$0xff]   ;;  %v123_v24 = vlaneseq }
  0x41   :  { %v1781_v6 = vld [vmem:[#allocation8 + $0x13c] ss:$12 sps:$4 sm:$0xff]   ;;  %v1786_v10 = vld [vmem:[#allocation8 + $0x2b8] ss:$12 sps:$4 sm:$0xff]   ;;  %v1791_v12 = vld [vmem:[#allocation8 + $0x120] ss:$12 sps:$4 sm:$0xff]  }
  0x42   :  { %1186 = vmatpush1.bf16.msra.mxu0 %v1743_v25  ;;  %v1783_v8 = vld [vmem:[#allocation8 + $0x2bc] ss:$12 sps:$4 sm:$0xff]   ;;  %v1789_v11 = vld [vmem:[#allocation8 + $0x2a4] ss:$12 sps:$4 sm:$0xff]   ;;  %v1792_v13 = vld [vmem:[#allocation8 + $0x2a0] ss:$12 sps:$4 sm:$0xff]  }
  0x43   :  { %1227 = vmatpush1.bf16.msra.mxu1 %v1744_v26  ;;  %1187 = vmatprep.subr.bf16.mxu0 %v1745_v27  ;;  %v1793_v14 = vld [vmem:[#allocation8 + $0x10c] ss:$12 sps:$4 sm:$0xff]   ;;  %v1797_v16 = vld [vmem:[#allocation8 + $0x108] ss:$12 sps:$4 sm:$0xff]   ;;  %v1803_v20 = vld [vmem:[#allocation8 + $0xf0] ss:$12 sps:$4 sm:$0xff]  }
  0x44   :  { %1228 = vmatprep.subr.bf16.mxu1 %v1747_v28  ;;  %v1795_v15 = vld [vmem:[#allocation8 + $0x28c] ss:$12 sps:$4 sm:$0xff]   ;;  %v1798_v17 = vld [vmem:[#allocation8 + $0x288] ss:$12 sps:$4 sm:$0xff]   ;;  %v1804_v21 = vld [vmem:[#allocation8 + $0x270] ss:$12 sps:$4 sm:$0xff]  }
  0x45   :  { %v1799_v18 = vld [vmem:[#allocation8 + $0xf4] ss:$12 sps:$4 sm:$0xff]   ;;  %v1805_v22 = vld [vmem:[#allocation8 + $0xdc] ss:$12 sps:$4 sm:$0xff]   ;;  %v124_v25 = vshrl.u32 %v123_v24, 7 }
  0x46   :  { %1188 = vmatpush1.bf16.msra.mxu0 %v1749_v29  ;;  %v1801_v19 = vld [vmem:[#allocation8 + $0x274] ss:$12 sps:$4 sm:$0xff]   ;;  %v1807_v23 = vld [vmem:[#allocation8 + $0x25c] ss:$12 sps:$4 sm:$0xff]   ;;  %v1809_v26 = vld [vmem:[#allocation8 + $0xd8] ss:$12 sps:$4 sm:$0xff]  }
  0x47   :  { %1229 = vmatpush1.bf16.msra.mxu1 %v1750_v30  ;;  %1189 = vmatprep.subr.bf16.mxu0 %v1751_v31  ;;  %v1810_v27 = vld [vmem:[#allocation8 + $0x258] ss:$12 sps:$4 sm:$0xff]   ;;  %v141_v31 = vsub.s32 4, %v124_v25  ;;  %v1830_v24 = vld [vmem:[#allocation8 + $0x140] ss:$12 sps:$4 sm:$0xff]  }
  0x48   :  { %1230 = vmatprep.subr.bf16.mxu1 %v1753_v32  ;;  %v1811_v28 = vld [vmem:[#allocation8 + $0xc4] ss:$12 sps:$4 sm:$0xff]   ;;  %v83_v30 = vld [vmem:[#allocation5] sm:$0x3f]  ;;  %v84_v32 = vld [vmem:[#allocation7] sm:$0x3f] }
  0x49   :  { %v1813_v29 = vld [vmem:[#allocation8 + $0x244] ss:$12 sps:$4 sm:$0xff]  }
  0x4a   :  { %1190 = vmatpush1.bf16.msra.mxu0 %v1755_v33  ;;  %v1815_v33 = vld [vmem:[#allocation8 + $0xc0] ss:$12 sps:$4 sm:$0xff]  }
  0x4b   :  { %1231 = vmatpush1.bf16.msra.mxu1 %v1756_v34  ;;  %1191 = vmatprep.subr.bf16.mxu0 %v1757_v35  ;;  %v1816_v34 = vld [vmem:[#allocation8 + $0x240] ss:$12 sps:$4 sm:$0xff]   ;;  %v142_v35 = vrot.slane %v83_v30, %v141_v31 }
  0x4c   :  { %1232 = vmatprep.subr.bf16.mxu1 %v1759_v36  ;;  %v179_v36 = vrot.slane %v84_v32, %v141_v31  ;;  %v1839_v31 = vld [vmem:[#allocation8 + $0x34c] ss:$12 sps:$4 sm:$0xff]  }
  0x4e   :  { %1192 = vmatpush1.bf16.msra.mxu0 %v1761_v37  ;;  %v1819_v37 = vld [vmem:[#allocation8 + $0x3ac] ss:$12 sps:$4 sm:$0xff]  }
  0x4f   :  { %1233 = vmatpush1.bf16.msra.mxu1 %v1762_v38  ;;  %1193 = vmatprep.subr.bf16.mxu0 %v1763_v39  ;;  %v1820_v38 = vld [vmem:[#allocation8 + $0x170] ss:$12 sps:$4 sm:$0xff]  }
  0x50   :  { %1234 = vmatprep.subr.bf16.mxu1 %v1765_v40 }
  0x52   :  { %1194 = vmatpush1.bf16.msra.mxu0 %v1767_v41 }
  0x53   :  { %1235 = vmatpush1.bf16.msra.mxu1 %v1768_v42  ;;  %1195 = vmatprep.subr.bf16.mxu0 %v1769_v43  ;;  %v2132_v42 = vsub.s32 1, %v124_v25  ;;  %v137_v43 = vsub.s32 3, %v124_v25 }
  0x54   :  { %1236 = vmatprep.subr.bf16.mxu1 %v1771_v44  ;;  %v2134_v44 = vsub.s32 0, %v124_v25 }
  0x56   :  { %1196 = vmatpush2.bf16.msra.mxu0 %v1773_v45  ;;  %v2136_v45 = vsub.s32 2, %v124_v25 }
  0x57   :  { %1237 = vmatpush2.bf16.msra.mxu1 %v1774_v46  ;;  %1197 = vmatprep.subr.bf16.mxu0 %v1775_v47  ;;  %v145_v46 = vsub.s32 5, %v124_v25  ;;  %v130_v47 = vrot.slane %v83_v30, %v2132_v42  ;;  %v1827_v25 = vld [vmem:[#allocation8 + $0x378] ss:$12 sps:$4 sm:$0xff]  }
  0x58   :  { %1238 = vmatprep.subr.bf16.mxu1 %v1777_v48  ;;  %v167_v48 = vrot.slane %v84_v32, %v2132_v42 }
  0x5a   :  { %1198 = vmatpush2.bf16.msra.mxu0 %v1779_v49  ;;  %v138_v49 = vrot.slane %v83_v30, %v137_v43 }
  0x5b   :  { %1239 = vmatpush2.bf16.msra.mxu1 %v1780_v50  ;;  %1199 = vmatprep.subr.bf16.mxu0 %v1781_v6  ;;  %v126_v50 = vrot.slane %v83_v30, %v2134_v44 }
  0x5c   :  { %1240 = vmatprep.subr.bf16.mxu1 %v1783_v8 }
  0x5e   :  { %1200 = vmatpush2.bf16.msra.mxu0 %v1785_v9 }
  0x5f   :  { %1241 = vmatpush2.bf16.msra.mxu1 %v1786_v10 }
  0x60   :  { %1242 = vmatprep.subr.bf16.mxu1 %v1789_v11 }
  0x63   :  { %1243 = vmatpush2.bf16.msra.mxu1 %v1792_v13 }
  0x64   :  { %1244 = vmatprep.subr.bf16.mxu1 %v1795_v15 }
  0x67   :  { %1245 = vmatpush2.bf16.msra.mxu1 %v1798_v17  ;;  %v1821_v17 = vld [vmem:[#allocation8 + $0xb0] ss:$12 sps:$4 sm:$0xff]  }
  0x68   :  { %1246 = vmatprep.subr.bf16.mxu1 %v1801_v19  ;;  %v1825_v19 = vld [vmem:[#allocation8 + $0x158] ss:$12 sps:$4 sm:$0xff]  }
  0x6b   :  { %1247 = vmatpush2.bf16.msra.mxu1 %v1804_v21  ;;  %v1822_v21 = vld [vmem:[#allocation8 + $0x390] ss:$12 sps:$4 sm:$0xff]  }
  0x6c   :  { %1248 = vmatprep.subr.bf16.mxu1 %v1807_v23  ;;  %v1829_v23 = vld [vmem:[#allocation8 + $0x37c] ss:$12 sps:$4 sm:$0xff]  }
  0x6f   :  { %1249 = vmatpush2.bf16.msra.mxu1 %v1810_v27  ;;  %v1834_v27 = vld [vmem:[#allocation8 + $0x364] ss:$12 sps:$4 sm:$0xff]  }
  0x70   :  { %1250 = vmatprep.subr.bf16.mxu1 %v1813_v29  ;;  %v1832_v29 = vld [vmem:[#allocation8 + $0x360] ss:$12 sps:$4 sm:$0xff]  }
  0x73   :  { %1251 = vmatpush2.bf16.msra.mxu1 %v1816_v34  ;;  %v1841_v34 = vld [vmem:[#allocation8 + $0x50] ss:$12 sps:$4 sm:$0xff]  }
  0x74   :  { %1648 = vmatprep.subr.bf16.mxu1 %v1820_v38  ;;  %v1846_v38 = vld [vmem:[#allocation8 + $0x38] ss:$12 sps:$4 sm:$0xff]  }
  0xc5   :  { %v91_v51 = vpop.xlane.xlu0 %90 }
  0xc6   :  { %v93_v52 = vmul.f32 0.0013020834, %v91_v51  ;;  %v134_v51 = vrot.slane %v83_v30, %v2136_v45 }
  0xc8   :  { %v2103_v53 = vsub.f32 %v2084_v0, %v93_v52  ;;  %v2106_v54 = vsub.f32 %v2086_v1, %v93_v52  ;;  %v2109_v55 = vsub.f32 %v2088_v2, %v93_v52  ;;  %v2112_v56 = vsub.f32 %v2090_v3, %v93_v52 }
  0xc9   :  { %v2119_v59 = vsub.f32 %v2094_v5, %v93_v52  ;;  %v2124_v62 = vsub.f32 %v2097_v7, %v93_v52  ;;  %v1787_v7 = vld [vmem:[#allocation8 + $0x124] ss:$12 sps:$4 sm:$0xff]  }
  0xca   :  { %v100_v57 = vmul.f32 %v2103_v53, %v2103_v53  ;;  %v101_v58 = vmul.f32 %v2106_v54, %v2106_v54  ;;  %v102_v60 = vmul.f32 %v2109_v55, %v2109_v55  ;;  %v103_v63 = vmul.f32 %v2112_v56, %v2112_v56  ;;  %1201 = vmatprep.subr.bf16.mxu0 %v1787_v7 }
  0xcb   :  { %v104_v1 = vmul.f32 %v2119_v59, %v2119_v59  ;;  %v105_v3 = vmul.f32 %v2124_v62, %v2124_v62  ;;  %1202 = vmatpush2.bf16.msra.mxu0 %v1791_v12 }
  0xcc   :  { %v106_v61 = vadd.f32 %v101_v58, %v100_v57  ;;  %1203 = vmatprep.subr.bf16.mxu0 %v1793_v14  ;;  %v175_v57 = vrot.slane %v84_v32, %v137_v43  ;;  %v163_v58 = vrot.slane %v84_v32, %v2134_v44  ;;  %v1851_v43 = vld [vmem:[#allocation8 + $0x20] ss:$12 sps:$4 sm:$0xff]  }
  0xce   :  { %v107_v0 = vadd.f32 %v106_v61, %v102_v60  ;;  %v171_v60 = vrot.slane %v84_v32, %v2136_v45  ;;  %v146_v61 = vrot.slane %v83_v30, %v145_v46  ;;  %v1836_v30 = vld [vmem:[#allocation8 + $0x68] ss:$12 sps:$4 sm:$0xff]  }
  0xcf   :  { %1204 = vmatpush2.bf16.msra.mxu0 %v1797_v16 }
  0xd0   :  { %v108_v2 = vadd.f32 %v107_v0, %v103_v63  ;;  %1205 = vmatprep.subr.bf16.mxu0 %v1799_v18  ;;  %v1824_v18 = vld [vmem:[#allocation8 + $0x394] ss:$12 sps:$4 sm:$0xff]  }
  0xd2   :  { %v109_v4 = vadd.f32 %v108_v2, %v104_v1 }
  0xd3   :  { %1206 = vmatpush2.bf16.msra.mxu0 %v1803_v20 }
  0xd4   :  { %v110_v5 = vadd.f32 %v109_v4, %v105_v3  ;;  %1207 = vmatprep.subr.bf16.mxu0 %v1805_v22  ;;  %v183_v4 = vrot.slane %v84_v32, %v145_v46  ;;  %v1826_v22 = vld [vmem:[#allocation8 + $0x98] ss:$12 sps:$4 sm:$0xff]   ;;  %v1840_v32 = vld [vmem:[#allocation8 + $0x110] ss:$12 sps:$4 sm:$0xff]  }
  0xd5   :  { %v1854_v46 = vld [vmem:[#allocation8 + $0x304] ss:$12 sps:$4 sm:$0xff]  }
  0xd6   :  { %111 = vadd.xlane.f32.xlu0 %v110_v5 }
  0xd7   :  { %1208 = vmatpush2.bf16.msra.mxu0 %v1809_v26  ;;  %v1831_v26 = vld [vmem:[#allocation8 + $0x80] ss:$12 sps:$4 sm:$0xff]  }
  0xd8   :  { %1209 = vmatprep.subr.bf16.mxu0 %v1811_v28  ;;  %v1835_v28 = vld [vmem:[#allocation8 + $0x128] ss:$12 sps:$4 sm:$0xff]  }
  0xdb   :  { %1210 = vmatpush2.bf16.msra.mxu0 %v1815_v33  ;;  %v1837_v33 = vld [vmem:[#allocation8 + $0x348] ss:$12 sps:$4 sm:$0xff]  }
  0xdc   :  { %1261 = vmatprep.subr.bf16.mxu0 %v1819_v37  ;;  %v1842_v37 = vld [vmem:[#allocation8 + $0x330] ss:$12 sps:$4 sm:$0xff]  }
 0x15f   :  { %v112_v39 = vpop.xlane.xlu0 %111 }
 0x160   :  { %v113_v40 = vmul.f32 0.0013020834, %v112_v39  ;;  %v1849_v39 = vld [vmem:[#allocation8 + $0x31c] ss:$12 sps:$4 sm:$0xff]  }
 0x162   :  { %v114_v41 = vadd.f32 1e-05, %v113_v40  ;;  %v1850_v40 = vld [vmem:[#allocation8 + $0xe0] ss:$12 sps:$4 sm:$0xff]  }
 0x164   :  { %1913 = vrsqrt.f32 %v114_v41  ;;  %v1847_v41 = vld [vmem:[#allocation8 + $0x318] ss:$12 sps:$4 sm:$0xff]  }
 0x171   :  { %v1914_v52 = vpop.eup %1913 }
 0x172   :  { %v117_v63 = vmul.f32 %v1914_v52, %v2106_v54  ;;  %v119_v0 = vmul.f32 %v1914_v52, %v2112_v56  ;;  %v116_v1 = vmul.f32 %v1914_v52, %v2103_v53  ;;  %v118_v2 = vmul.f32 %v1914_v52, %v2109_v55 }
 0x173   :  { %v121_v3 = vmul.f32 %v1914_v52, %v2124_v62  ;;  %v120_v5 = vmul.f32 %v1914_v52, %v2119_v59  ;;  %v1817_v62 = vld [vmem:[#allocation8 + $0x3a8] ss:$12 sps:$4 sm:$0xff]  }
 0x174   :  { %v154_v6 = vmul.f32 %v130_v47, %v117_v63  ;;  %v156_v8 = vmul.f32 %v138_v49, %v119_v0  ;;  %v153_v9 = vmul.f32 %v126_v50, %v116_v1  ;;  %v155_v10 = vmul.f32 %v134_v51, %v118_v2  ;;  %v1855_v47 = vld [vmem:[#allocation8 + $0xc8] ss:$12 sps:$4 sm:$0xff]   ;;  %v1859_v50 = vld [vmem:[#allocation8 + $0x46c] ss:$12 sps:$4 sm:$0xff]   ;;  %v1860_v51 = vld [vmem:[#allocation8 + $0x2f0] ss:$12 sps:$4 sm:$0xff]  }
 0x175   :  { %v158_v7 = vmul.f32 %v146_v61, %v121_v3  ;;  %v157_v11 = vmul.f32 %v142_v35, %v120_v5  ;;  %v1844_v35 = vld [vmem:[#allocation8 + $0x334] ss:$12 sps:$4 sm:$0xff]   ;;  %v1862_v61 = vld [vmem:[#allocation8 + $0x450] ss:$12 sps:$4 sm:$0xff]   ;;  %v1866_v63 = vld [vmem:[#allocation8 + $0x218] ss:$12 sps:$4 sm:$0xff]  }
 0x176   :  { %v191_v12 = vadd.f32 %v167_v48, %v154_v6  ;;  %v193_v13 = vadd.f32 %v175_v57, %v156_v8  ;;  %v190_v54 = vadd.f32 %v163_v58, %v153_v9  ;;  %v192_v14 = vadd.f32 %v171_v60, %v155_v10  ;;  %v1852_v48 = vld [vmem:[#allocation8 + $0x300] ss:$12 sps:$4 sm:$0xff]   ;;  %v1856_v49 = vld [vmem:[#allocation8 + $0x8] ss:$12 sps:$4 sm:$0xff]   ;;  %v1861_v57 = vld [vmem:[#allocation8 + $0x230] ss:$12 sps:$4 sm:$0xff]  }
 0x177   :  { %v195_v56 = vadd.f32 %v183_v4, %v158_v7  ;;  %v2150_v15 = vadd.f32 %v179_v36, %v157_v11  ;;  %v1845_v36 = vld [vmem:[#allocation8 + $0xf8] ss:$12 sps:$4 sm:$0xff]   ;;  %v1857_v52 = vld [vmem:[#allocation8 + $0x468] ss:$12 sps:$4 sm:$0xff]   ;;  %v1870_v1 = vld [vmem:[#allocation8 + $0x2c0] ss:$12 sps:$4 sm:$0xff]  }
 0x178   :  { %v197_v53 = vpack.c.bf16 %v191_v12, %v191_v12  ;;  %v2152_v55 = vpack.c.bf16 %v193_v13, %v193_v13  ;;  %v2154_v16 = vpack.c.bf16 %v190_v54, %v190_v54  ;;  %v2156_v59 = vpack.c.bf16 %v192_v14, %v192_v14  ;;  %v1864_v58 = vld [vmem:[#allocation8 + $0x454] ss:$12 sps:$4 sm:$0xff]   ;;  %v1865_v60 = vld [vmem:[#allocation8 + $0x2d8] ss:$12 sps:$4 sm:$0xff]   ;;  %v1869_v0 = vld [vmem:[#allocation8 + $0x43c] ss:$12 sps:$4 sm:$0xff]  }
 0x179   :  { %v2161_v20 = vpack.c.bf16 %v195_v56, %v195_v56  ;;  %v1867_v2 = vld [vmem:[#allocation8 + $0x438] ss:$12 sps:$4 sm:$0xff]   ;;  %v1871_v3 = vld [vmem:[#allocation8 + $0x200] ss:$12 sps:$4 sm:$0xff]   ;;  %v1875_v5 = vld [vmem:[#allocation8 + $0x2a8] ss:$12 sps:$4 sm:$0xff]  }
 0x17a   :  { %1211 = vmatprep.mubr.bf16.mxu0 %v197_v53  ;;  %1252 = vmatprep.mubr.bf16.mxu1 %v2152_v55  ;;  %v1874_v4 = vld [vmem:[#allocation8 + $0x424] ss:$12 sps:$4 sm:$0xff]   ;;  %v1872_v6 = vld [vmem:[#allocation8 + $0x420] ss:$12 sps:$4 sm:$0xff]   ;;  %v1876_v8 = vld [vmem:[#allocation8 + $0x1e8] ss:$12 sps:$4 sm:$0xff]  }
 0x17b   :  { %1212 = vmatmul.mubr.bf16.vlgmr.msra.gmra.mxu0 %v2154_v16  ;;  %1253 = vmatmul.mubr.bf16.vlgmr.msra.gmra.mxu1 %v2156_v59  ;;  %v1879_v9 = vld [vmem:[#allocation8 + $0x40c] ss:$12 sps:$4 sm:$0xff]   ;;  %v1880_v10 = vld [vmem:[#allocation8 + $0x290] ss:$12 sps:$4 sm:$0xff]   ;;  %v1877_v7 = vld [vmem:[#allocation8 + $0x408] ss:$12 sps:$4 sm:$0xff]  }
 0x17c   :  { %1262 = vmatpush1.bf16.msra.mxu0 %v1817_v62  ;;  %1649 = vmatpush3.bf16.msra.mxu1 %v1821_v17  ;;  %v1881_v11 = vld [vmem:[#allocation8 + $0x1d0] ss:$12 sps:$4 sm:$0xff]   ;;  %v1884_v12 = vld [vmem:[#allocation8 + $0x3f4] ss:$12 sps:$4 sm:$0xff]   ;;  %v1885_v13 = vld [vmem:[#allocation8 + $0x278] ss:$12 sps:$4 sm:$0xff]  }
 0x17d   :  { %1293 = vmatprep.mubr.bf16.mxu0 %v2161_v20  ;;  %1334 = vmatprep.mubr.bf16.mxu1 %v197_v53  ;;  %v1882_v54 = vld [vmem:[#allocation8 + $0x3f0] ss:$12 sps:$4 sm:$0xff]   ;;  %v1886_v14 = vld [vmem:[#allocation8 + $0x1b8] ss:$12 sps:$4 sm:$0xff]   ;;  %v1890_v53 = vld [vmem:[#allocation8 + $0x260] ss:$12 sps:$4 sm:$0xff]  }
 0x17e   :  { %1263 = vmatprep.subr.bf16.mxu0 %v1824_v18  ;;  %1650 = vmatprep.subr.bf16.mxu1 %v1825_v19  ;;  %v1889_v56 = vld [vmem:[#allocation8 + $0x3dc] ss:$12 sps:$4 sm:$0xff]   ;;  %v1891_v62 = vld [vmem:[#allocation8 + $0x1a0] ss:$12 sps:$4 sm:$0xff]  }
 0x17f   :  { %v1895_v17 = vld [vmem:[#allocation8 + $0x248] ss:$12 sps:$4 sm:$0xff]   ;;  %v1892_v18 = vld [vmem:[#allocation8 + $0x3c0] ss:$12 sps:$4 sm:$0xff]  }
 0x180   :  { %1264 = vmatpush1.bf16.msra.mxu0 %v1822_v21  ;;  %1651 = vmatpush3.bf16.msra.mxu1 %v1826_v22  ;;  %v1896_v19 = vld [vmem:[#allocation8 + $0x188] ss:$12 sps:$4 sm:$0xff]   ;;  %v1897_v21 = vld [vmem:[#allocation8 + $0x470] ss:$12 sps:$4 sm:$0xff]  }
 0x181   :  { %1265 = vmatprep.subr.bf16.mxu0 %v1829_v23  ;;  %1652 = vmatprep.subr.bf16.mxu1 %v1830_v24  ;;  %v1898_v22 = vld [vmem:[#allocation8 + $0x3b0] ss:$12 sps:$4 sm:$0xff]   ;;  %v200_v23 = vpack.c.bf16 %v2150_v15, %v2150_v15  ;;  %v1899_v24 = vld [vmem:[#allocation8 + $0x458] ss:$12 sps:$4 sm:$0xff]  }
 0x182   :  { %v1906_v15 = vld [vmem:[#allocation8 + $0x350] ss:$12 sps:$4 sm:$0xff]  }
 0x184   :  { %1266 = vmatpush1.bf16.msra.mxu0 %v1827_v25  ;;  %1653 = vmatpush3.bf16.msra.mxu1 %v1831_v26  ;;  %v1900_v25 = vld [vmem:[#allocation8 + $0x398] ss:$12 sps:$4 sm:$0xff]   ;;  %v1901_v26 = vld [vmem:[#allocation8 + $0x440] ss:$12 sps:$4 sm:$0xff]  }
 0x185   :  { %1267 = vmatprep.subr.bf16.mxu0 %v1834_v27  ;;  %1654 = vmatprep.subr.bf16.mxu1 %v1835_v28  ;;  %v1902_v27 = vld [vmem:[#allocation8 + $0x380] ss:$12 sps:$4 sm:$0xff]   ;;  %v1903_v28 = vld [vmem:[#allocation8 + $0x428] ss:$12 sps:$4 sm:$0xff]  }
 0x188   :  { %1268 = vmatpush1.bf16.msra.mxu0 %v1832_v29  ;;  %1655 = vmatpush3.bf16.msra.mxu1 %v1836_v30  ;;  %v1904_v29 = vld [vmem:[#allocation8 + $0x368] ss:$12 sps:$4 sm:$0xff]   ;;  %v1905_v30 = vld [vmem:[#allocation8 + $0x410] ss:$12 sps:$4 sm:$0xff]  }
 0x189   :  { %1269 = vmatprep.subr.bf16.mxu0 %v1839_v31  ;;  %1656 = vmatprep.subr.bf16.mxu1 %v1840_v32  ;;  %v1907_v31 = vld [vmem:[#allocation8 + $0x3f8] ss:$12 sps:$4 sm:$0xff]   ;;  %v1909_v32 = vld [vmem:[#allocation8 + $0x3e0] ss:$12 sps:$4 sm:$0xff]  }
 0x18c   :  { %1270 = vmatpush1.bf16.msra.mxu0 %v1837_v33  ;;  %1657 = vmatpush3.bf16.msra.mxu1 %v1841_v34  ;;  %v1911_v33 = vld [vmem:[#allocation8 + $0x3c8] ss:$12 sps:$4 sm:$0xff]  }
 0x18d   :  { %1271 = vmatprep.subr.bf16.mxu0 %v1844_v35  ;;  %1658 = vmatprep.subr.bf16.mxu1 %v1845_v36  ;;  %v1912_v34 = vld [vmem:[#allocation8 + $0x308] ss:$12 sps:$4 sm:$0xff]   ;;  %v394_v35 = vld [vmem:[%s2195_s4] sm:$0x7] }
 0x18e   :  { %v399_v36 = vrot.slane %v394_v35, %v2134_v44 }
 0x190   :  { %1272 = vmatpush1.bf16.msra.mxu0 %v1842_v37  ;;  %1659 = vmatpush3.bf16.msra.mxu1 %v1846_v38  ;;  %v403_v37 = vrot.slane %v394_v35, %v2132_v42 }
 0x191   :  { %1273 = vmatprep.subr.bf16.mxu0 %v1849_v39  ;;  %1660 = vmatprep.subr.bf16.mxu1 %v1850_v40 }
 0x194   :  { %1274 = vmatpush1.bf16.msra.mxu0 %v1847_v41  ;;  %1661 = vmatpush3.bf16.msra.mxu1 %v1851_v43 }
 0x195   :  { %1275 = vmatprep.subr.bf16.mxu0 %v1854_v46  ;;  %1662 = vmatprep.subr.bf16.mxu1 %v1855_v47 }
 0x198   :  { %1276 = vmatpush1.bf16.msra.mxu0 %v1852_v48  ;;  %1663 = vmatpush3.bf16.msra.mxu1 %v1856_v49 }
 0x199   :  { %1277 = vmatprep.subr.bf16.mxu0 %v1859_v50  ;;  %1670 = vmatprep.subr.bf16.mxu1 %v1860_v51 }
 0x19b   :  { %1335 = vmatmul.mubr.bf16.vlgmr.msra.gmra.mxu1 %v2154_v16  ;;  %v1894_v16 = vld [vmem:[#allocation8 + $0x3c4] ss:$12 sps:$4 sm:$0xff]  }
 0x19c   :  { %1278 = vmatpush2.bf16.msra.mxu0 %v1857_v52  ;;  %1671 = vmatpush3.bf16.msra.mxu1 %v1861_v57 }
 0x19d   :  { %1374 = vmatprep.mubr.bf16.mxu1 %v2152_v55  ;;  %1279 = vmatprep.subr.bf16.mxu0 %v1864_v58  ;;  %v1887_v55 = vld [vmem:[#allocation8 + $0x3d8] ss:$12 sps:$4 sm:$0xff]  }
 0x19e   :  { %1672 = vmatprep.subr.bf16.mxu1 %v1865_v60 }
 0x1a0   :  { %1280 = vmatpush2.bf16.msra.mxu0 %v1862_v61  ;;  %1673 = vmatpush3.bf16.msra.mxu1 %v1866_v63 }
 0x1a1   :  { %1281 = vmatprep.subr.bf16.mxu0 %v1869_v0  ;;  %1674 = vmatprep.subr.bf16.mxu1 %v1870_v1 }
 0x1a4   :  { %1282 = vmatpush2.bf16.msra.mxu0 %v1867_v2  ;;  %1675 = vmatpush3.bf16.msra.mxu1 %v1871_v3 }
 0x1a5   :  { %1283 = vmatprep.subr.bf16.mxu0 %v1874_v4  ;;  %1676 = vmatprep.subr.bf16.mxu1 %v1875_v5 }
 0x1a8   :  { %1284 = vmatpush2.bf16.msra.mxu0 %v1872_v6  ;;  %1677 = vmatpush3.bf16.msra.mxu1 %v1876_v8  ;;  %v407_v8 = vrot.slane %v394_v35, %v2136_v45 }
 0x1a9   :  { %1285 = vmatprep.subr.bf16.mxu0 %v1879_v9  ;;  %1678 = vmatprep.subr.bf16.mxu1 %v1880_v10 }
 0x1ac   :  { %1286 = vmatpush2.bf16.msra.mxu0 %v1877_v7  ;;  %1679 = vmatpush3.bf16.msra.mxu1 %v1881_v11 }
 0x1ad   :  { %1287 = vmatprep.subr.bf16.mxu0 %v1884_v12  ;;  %1680 = vmatprep.subr.bf16.mxu1 %v1885_v13 }
 0x1b0   :  { %1288 = vmatpush2.bf16.msra.mxu0 %v1882_v54  ;;  %1681 = vmatpush3.bf16.msra.mxu1 %v1886_v14 }
 0x1b1   :  { %1289 = vmatprep.subr.bf16.mxu0 %v1889_v56  ;;  %1682 = vmatprep.subr.bf16.mxu1 %v1890_v53 }
 0x1b4   :  { %1290 = vmatpush2.bf16.msra.mxu0 %v1887_v55  ;;  %1683 = vmatpush3.bf16.msra.mxu1 %v1891_v62 }
 0x1b5   :  { %1291 = vmatprep.subr.bf16.mxu0 %v1894_v16  ;;  %1684 = vmatprep.subr.bf16.mxu1 %v1895_v17 }
 0x1b8   :  { %1292 = vmatpush2.bf16.msra.mxu0 %v1892_v18  ;;  %1685 = vmatpush3.bf16.msra.mxu1 %v1896_v19 }
 0x1b9   :  { %1692 = vmatprep.subr.bf16.mxu0 %v1897_v21 }
 0x1bb   :  { %1294 = vmatmul.mubr.bf16.vlgmr.msra.gmra.mxu0 %v200_v23  ;;  %1375 = vmatmul.mubr.bf16.vlgmr.msra.gmra.mxu1 %v2156_v59  ;;  %v1908_v59 = vld [vmem:[#allocation8 + $0x338] ss:$12 sps:$4 sm:$0xff]  }
 0x1bc   :  { %1693 = vmatpush3.bf16.msra.mxu0 %v1898_v22  ;;  %1414 = vmatprep.mubr.bf16.mxu0 %v2161_v20  ;;  %v1910_v20 = vld [vmem:[#allocation8 + $0x320] ss:$12 sps:$4 sm:$0xff]  }
 0x1bd   :  { %1694 = vmatprep.subr.bf16.mxu0 %v1899_v24 }
 0x1c0   :  { %1695 = vmatpush3.bf16.msra.mxu0 %v1900_v25 }
 0x1c1   :  { %1696 = vmatprep.subr.bf16.mxu0 %v1901_v26 }
 0x1c4   :  { %1697 = vmatpush3.bf16.msra.mxu0 %v1902_v27 }
 0x1c5   :  { %1698 = vmatprep.subr.bf16.mxu0 %v1903_v28 }
 0x1c8   :  { %1699 = vmatpush3.bf16.msra.mxu0 %v1904_v29 }
 0x1c9   :  { %1700 = vmatprep.subr.bf16.mxu0 %v1905_v30 }
 0x1cc   :  { %1701 = vmatpush3.bf16.msra.mxu0 %v1906_v15 }
 0x1cd   :  { %1702 = vmatprep.subr.bf16.mxu0 %v1907_v31  ;;  %v1422_v31 = vld [vmem:[%s2196_s5] sm:$0x7]  ;;  %s2031_s5 = smov [#allocation10]  }
 0x1ce   :  { %s1493_s24 = sshll.u32 %s2031_s5, 4  ;;  %s1494_s24 = int_to_ptr.vmem [resolvable:$true] %s1493_s24 }
 0x1cf   :  { %p2002_p7 = scmp.lt.s32.totalorder %s1494_s24, %s1494_s24 }
 0x1d0   :  { %1703 = vmatpush3.bf16.msra.mxu0 %v1908_v59  ;;  %v1423_v59 = vld [vmem:[%s2197_s6] sm:$0x7]  ;;  %s1997_s6 = scalar_lea.vmem %s1494_s24, 384 }
 0x1d1   :  { %1704 = vmatprep.subr.bf16.mxu0 %v1909_v32  ;;  %v1450_v32 = vrot.slane %v1422_v31, %v2134_v44  ;;  %v1469_v35 = vrot.slane %v1423_v59, %v2134_v44  ;;  %p1998_p6 = scmp.ne.s32.totalorder %s1494_s24, %s1997_s6  ;;  %p2003_p8 = scmp.lt.s32.totalorder %s1997_s6, %s1997_s6 }
 0x1d3   :  { %p2004_p9 = por %p2003_p8, %p2002_p7 }
 0x1d4   :  { %1705 = vmatpush3.bf16.msra.mxu0 %v1910_v20  ;;  %v1454_v20 = vrot.slane %v1422_v31, %v2132_v42 }
 0x1d5   :  { %1706 = vmatprep.subr.bf16.mxu0 %v1911_v33  ;;  %v1458_v33 = vrot.slane %v1422_v31, %v2136_v45  ;;  %p2005_p10 = pnand %p2004_p9, %p1998_p6 }
 0x1d8   :  { %1707 = vmatpush3.bf16.msra.mxu0 %v1912_v34 }
 0x1db   :  { %1415 = vmatmul.mubr.bf16.vlgmr.msra.gmra.mxu0 %v200_v23 }
 0x23b   :  { %v1213_v38 = vpop.f32.mrf.mxu0  ;;  %v1254_v39 = vpop.f32.mrf.mxu1 }
 0x23c   :  { %v1214_v40 = vadd.f32 %v1213_v38, %v399_v36  ;;  %v1473_v36 = vrot.slane %v1423_v59, %v2132_v42 }
 0x23d   :  { %v1215_v41 = vpop.f32.mrf.mxu0  ;;  %v1256_v43 = vpop.f32.mrf.mxu1 }
 0x23e   :  { %v1255_v46 = vadd.f32 %v1254_v39, %v1214_v40  ;;  %v1216_v47 = vadd.f32 %v1215_v41, %v403_v37  ;;  %v1477_v40 = vrot.slane %v1423_v59, %v2136_v45 }
 0x23f   :  { %v1217_v48 = vpop.f32.mrf.mxu0  ;;  %v1258_v49 = vpop.f32.mrf.mxu1 }
 0x240   :  { %v1257_v50 = vadd.f32 %v1256_v43, %v1216_v47 }
 0x241   :  { %v1218_v51 = vpop.f32.mrf.mxu0  ;;  %v1259_v52 = vpop.f32.mrf.mxu1 }
 0x25b   :  { %v1664_v57 = vpop.f32.mrf.mxu1 }
 0x25d   :  { %v1665_v58 = vpop.f32.mrf.mxu1 }
 0x25e   :  { %v1666_v9 = vadd.f32 %v1665_v58, %v1664_v57 }
 0x25f   :  { %v1667_v60 = vpop.f32.mrf.mxu1 }
 0x260   :  { %v1337_v11 = vadd.f32 %v1666_v9, %v407_v8 }
 0x261   :  { %v1668_v61 = vpop.f32.mrf.mxu1 }
 0x27b   :  { %v1295_v63 = vpop.f32.mrf.mxu0  ;;  %v1686_v0 = vpop.f32.mrf.mxu1 }
 0x27c   :  { %v1296_v54 = vadd.f32 %v1295_v63, %v1255_v46 }
 0x27d   :  { %v1297_v1 = vpop.f32.mrf.mxu0  ;;  %v1687_v2 = vpop.f32.mrf.mxu1 }
 0x27e   :  { %v1688_v10 = vadd.f32 %v1687_v2, %v1686_v0  ;;  %v1298_v12 = vadd.f32 %v1297_v1, %v1257_v50 }
 0x27f   :  { %v1299_v3 = vpop.f32.mrf.mxu0  ;;  %v1689_v4 = vpop.f32.mrf.mxu1 }
 0x280   :  { %v1377_v14 = vadd.f32 %v1688_v10, %v1337_v11  ;;  %v1424_v62 = vadd.f32 %v1298_v12, %v1296_v54 }
 0x281   :  { %v1300_v5 = vpop.f32.mrf.mxu0  ;;  %v1690_v6 = vpop.f32.mrf.mxu1 }
 0x29b   :  { %v1708_v7 = vpop.f32.mrf.mxu0 }
 0x29d   :  { %v1709_v13 = vpop.f32.mrf.mxu0 }
 0x29e   :  { %v1710_v56 = vadd.f32 %v1709_v13, %v1708_v7 }
 0x29f   :  { %v1711_v53 = vpop.f32.mrf.mxu0 }
 0x2a0   :  { %v1417_v55 = vadd.f32 %v1710_v56, %v1377_v14 }
 0x2a1   :  { %v1712_v16 = vpop.f32.mrf.mxu0 }
 0x2a2   :  { %v1425_v17 = vadd.f32 %v1424_v62, %v1417_v55 }
 0x2a4   :  { %1426 = vadd.xlane.f32.xlu1 %v1425_v17 }
 0x32d   :  { %v1427_v18 = vpop.xlane.xlu1 %1426 }
 0x32e   :  { %v1429_v19 = vmul.f32 0.0026041667, %v1427_v18 }
 0x330   :  { %v1430_v21 = vsub.f32 %v1296_v54, %v1429_v19  ;;  %v1431_v22 = vsub.f32 %v1298_v12, %v1429_v19  ;;  %v1432_v23 = vsub.f32 %v1417_v55, %v1429_v19 }
 0x332   :  { %v1433_v24 = vmul.f32 %v1430_v21, %v1430_v21  ;;  %v1434_v25 = vmul.f32 %v1431_v22, %v1431_v22  ;;  %v1435_v26 = vmul.f32 %v1432_v23, %v1432_v23 }
 0x334   :  { %v1436_v27 = vadd.f32 %v1434_v25, %v1433_v24 }
 0x336   :  { %v1437_v28 = vadd.f32 %v1436_v27, %v1435_v26 }
 0x338   :  { %1438 = vadd.xlane.f32.xlu1 %v1437_v28 }
 0x3c1   :  { %v1439_v29 = vpop.xlane.xlu1 %1438 }
 0x3c2   :  { %v1440_v30 = vmul.f32 0.0026041667, %v1439_v29 }
 0x3c4   :  { %v1441_v15 = vadd.f32 1e-05, %v1440_v30 }
 0x3c6   :  { %1915 = vrsqrt.f32 %v1441_v15 }
 0x3d3   :  { %v1916_v34 = vpop.eup %1915 }
 0x3d4   :  { %v1443_v37 = vmul.f32 %v1916_v34, %v1430_v21  ;;  %v1444_v38 = vmul.f32 %v1916_v34, %v1431_v22  ;;  %v1445_v39 = vmul.f32 %v1916_v34, %v1432_v23 }
 0x3d6   :  { %v1462_v41 = vmul.f32 %v1450_v32, %v1443_v37  ;;  %v1463_v43 = vmul.f32 %v1454_v20, %v1444_v38  ;;  %v1464_v46 = vmul.f32 %v1458_v33, %v1445_v39 }
 0x3d8   :  { %v1481_v47 = vadd.f32 %v1469_v35, %v1462_v41  ;;  %v1482_v48 = vadd.f32 %v1473_v36, %v1463_v43  ;;  %v1483_v49 = vadd.f32 %v1477_v40, %v1464_v46 }
 0x3da   :  { %1484 = vst [vmem:[#allocation10] sm:$0xff] %v1481_v47  ;;  %1485 = vst [vmem:[#allocation10 + $0x8] sm:$0xff] %v1482_v48 }
 0x3db   :  { %1486 = vst [vmem:[#allocation10 + $0x10] sm:$0xff] %v1483_v49 }
 0x3dc   :  { %2008 = shalt.err (!%p2005_p10)
}
 0x3dd   :  { %1496 = dma.vmem_to_hbm [thread:$0]  %s1494_s24, 384, %s2198_s7, [#allocation4]  }
 0x3de   :  { %2023 = dma.done.wait [#allocation4], 384  }
 0x3df   :  { %2024 = vsyncadd [#allocation4], 4294966912 }
 0x3e0   :  { %1500 = vsyncpa [#allocation3], 1 }
 0x3e1   :  { %1501 = vsyncpa [#allocation6], 1 }
 0x3e2   :  { %1502 = vsyncpa [#allocation9], 1 }
 0x3e3   :  { %1503 = vsyncpa [#allocation4], 1 }

</bundles_post_ra>
